<compile_context>
chip_gen: v7x
topology: tpu7x:2x2x1
jax: 0.10.0
libtpu: 0.0.40
codegen_flags: <defaults>
</compile_context>

<pallas_src>
import numpy as np
import jax
import jax.numpy as jnp
from jax.experimental import pallas as pl
from jax.experimental.pallas import tpu as pltpu

# ----------------------------- configuration (small shapes) -----------------
B = 2                    # batch
NCHAN = 4                # EEG channels
NTIME = 16               # time samples
NCLASS = 3               # classes
NBANDS = 2               # filter bands
M = 4                    # m
SMALL_M = 2              # small_m (fixed in the module)
STRIDE_FACTOR = 4
SF = STRIDE_FACTOR
IDX_LOCAL_GRAPH = (2, 2)               # channel-group widths
IDX = (0, 2, 1, 3)                     # channel permutation, len == NCHAN
NGROUP = len(IDX_LOCAL_GRAPH)
H = M * NBANDS                         # m*nBands feature channels (8)
FIN_ALL = SMALL_M * NBANDS * NGROUP    # linear_all in-features (8)
SEG = NTIME // STRIDE_FACTOR           # samples per variance window (4)
NC = NBANDS * NCHAN                    # band*channel rows (8)
BN_EPS = 1e-5
LANE_IN = NC * NTIME                   # 128 input lanes   (band,chan,time)
LANE_F = FIN_ALL * NTIME               # 128 SCB lanes     (feature,time)
LANE_Y = H * NTIME                     # 128 lanes         (feature,time)
LANE_LV = H * SF                       # 32 lanes          (feature,window)
LANE_SC = H * SF * SF                  # 128 lanes         (feature,query,key)
LANE_PAD = 128                         # lane-dense classifier output width
NEG_BIG = -1e30                        # "-inf" for padded classifier lanes

# ----------------------------- parameter setup (deterministic) --------------
_key = jax.random.PRNGKey(42)
def _nk():
    global _key
    _key, sub = jax.random.split(_key)
    return sub

def renorm_rows(w, max_norm):
    """torch.renorm(p=2, dim=0, maxnorm=max_norm) equivalent."""
    flat = w.reshape(w.shape[0], -1)
    norms = jnp.sqrt(jnp.sum(flat * flat, axis=1, keepdims=True))
    scale = jnp.where(norms > max_norm, max_norm / jnp.maximum(norms, 1e-12), 1.0)
    return (flat * scale).reshape(w.shape)

def _standardize(v):
    return (v - np.mean(v)) / np.std(v)

# channel "locations" -> synthetic sinusoidal location data (generate_loc_data_init)
_chann_locs = np.array([[0.3, 1.1, 0.2],
                        [0.7, 0.9, 1.5],
                        [1.2, 1.3, 0.4],
                        [0.5, 0.6, 2.0]], dtype=np.float64)
for _i in range(_chann_locs.shape[1]):
    _chann_locs[:, _i] = _standardize(_chann_locs[:, _i])
_xg = np.arange(NTIME)
LOC_SINGLE_np = np.stack(
    [_chann_locs[i, 0] * np.sin(_xg * _chann_locs[i, 1] + _chann_locs[i, 2])
     for i in range(NCHAN)]).astype(np.float64)            # (NCHAN, NTIME)

# per-group SCB params: grouped conv (nBands groups, small_m filters each) + BN(eval) + swish
GROUP_PARAMS = []
for _cw in IDX_LOCAL_GRAPH:
    w = 0.5 * jax.random.normal(_nk(), (SMALL_M * NBANDS, _cw), jnp.float32)
    w = renorm_rows(w, 2.0)                                   # max_norm=2 constraint
    bias = 0.1 * jax.random.normal(_nk(), (SMALL_M * NBANDS,), jnp.float32)
    gamma = 1.0 + 0.1 * jax.random.normal(_nk(), (SMALL_M * NBANDS,), jnp.float32)
    beta = 0.1 * jax.random.normal(_nk(), (SMALL_M * NBANDS,), jnp.float32)
    rmean = 0.1 * jax.random.normal(_nk(), (SMALL_M * NBANDS,), jnp.float32)
    rvar = 0.5 + jnp.abs(jax.random.normal(_nk(), (SMALL_M * NBANDS,), jnp.float32))
    eff_scale = gamma / jnp.sqrt(rvar + BN_EPS)               # fold BN (eval) + conv bias
    eff_shift = beta + (bias - rmean) * eff_scale
    GROUP_PARAMS.append((np.asarray(w, np.float64).reshape(NBANDS, SMALL_M, _cw),
                         np.asarray(eff_scale, np.float64).reshape(NBANDS, SMALL_M),
                         np.asarray(eff_shift, np.float64).reshape(NBANDS, SMALL_M)))

# dense "multi_conv" matrix: channel-selection + grouped conv + folded BN scale.
# feature ordering matches torch cat(dim=2)+reshape: f = (band*SMALL_M + o)*NGROUP + gi
W_SCB_EFF_np = np.zeros((FIN_ALL, NC), np.float64)
SHIFT_SCB_np = np.zeros((FIN_ALL,), np.float64)
_start = 0
for _gi, _cw in enumerate(IDX_LOCAL_GRAPH):
    _idx_g = IDX[_start:_start + _cw]
    _start += _cw
    _w3, _sc, _sh = GROUP_PARAMS[_gi]
    for _band in range(NBANDS):
        for _o in range(SMALL_M):
            _f = (_band * SMALL_M + _o) * NGROUP + _gi
            SHIFT_SCB_np[_f] = _sh[_band, _o]
            for _c in range(_cw):
                W_SCB_EFF_np[_f, _band * NCHAN + _idx_g[_c]] = _sc[_band, _o] * _w3[_band, _o, _c]

# linear_all : Linear(FIN_ALL -> H).  Its bias is a per-(batch,feature) constant in
# time, which cancels exactly inside the per-window variance -> omitted (exact).
W_LA_np = np.asarray(0.3 * jax.random.normal(_nk(), (H, FIN_ALL), jnp.float32), np.float64)

# per-feature MultiheadAttention(embed_dim=1, num_heads=1): scalars per feature
IN_W_np = np.asarray(0.5 * jax.random.normal(_nk(), (H, 3), jnp.float32), np.float64)   # wq,wk,wv
IN_B_np = np.asarray(0.1 * jax.random.normal(_nk(), (H, 3), jnp.float32), np.float64)   # bq,bk,bv
OUT_W_np = np.asarray(0.5 * jax.random.normal(_nk(), (H,), jnp.float32), np.float64)    # out_proj w
OUT_B_np = np.asarray(0.1 * jax.random.normal(_nk(), (H,), jnp.float32), np.float64)    # out_proj b

# lastLayer : LinearWithConstraint(H*SF -> nClass, max_norm=0.5) + LogSoftmax
W_LAST_np = np.asarray(
    renorm_rows(0.3 * jax.random.normal(_nk(), (NCLASS, H * SF), jnp.float32), 0.5), np.float64)
B_LAST_np = np.asarray(0.1 * jax.random.normal(_nk(), (1, NCLASS), jnp.float32), np.float64)[0]

# ----------------------------- fused host-side constants --------------------
_I_T = np.eye(NTIME, dtype=np.float64)

# W1[(band*NCHAN+c)*T + t, f*T + t'] = W_SCB_EFF[f, bc] * (t==t')  -> one 128x128 dot
_W1 = np.kron(W_SCB_EFF_np.T, _I_T)                              # (128, 128)
# loc contribution + conv-bias/BN shift, per (feature, time) lane
_loc_bc = np.tile(LOC_SINGLE_np, (NBANDS, 1))                    # (NC, T)
_SH1 = (W_SCB_EFF_np @ _loc_bc + SHIFT_SCB_np[:, None]).reshape(-1)   # (128,)
# W2[f*T + t, h*T + t'] = W_LA[h, f] * (t==t')
_W2 = np.kron(W_LA_np.T, _I_T)                                   # (128, 128)
# per-window sum pooling: P3[h*T + t, h'*SF + s] = (h==h') * (t//SEG == s)
_pool_small = np.zeros((NTIME, SF), np.float64)
for _t in range(NTIME):
    _pool_small[_t, _t // SEG] = 1.0
_P3 = np.kron(np.eye(H, dtype=np.float64), _pool_small)          # (128, 32)
# attention expand / reduce matrices (lane index = h*SF*SF + s*SF + s')
_EQ = np.kron(np.eye(LANE_LV, dtype=np.float64), np.ones((1, SF), np.float64))   # (32, 128)
_EK = np.kron(np.eye(H, dtype=np.float64),
              np.kron(np.ones((1, SF), np.float64), np.eye(SF, dtype=np.float64)))  # (32, 128)
_SUMK = _EQ.T                                                    # (128, 32)
# classifier with folded out_proj:  W'[h*SF+s, c] = wo[h] * W_LAST[c, h*SF+s]
_WL = np.zeros((LANE_LV, LANE_PAD), np.float64)
_WL[:, :NCLASS] = np.repeat(OUT_W_np, SF)[:, None] * W_LAST_np.T
_BLAST = np.full((LANE_PAD,), NEG_BIG, np.float64)
_BLAST[:NCLASS] = B_LAST_np + W_LAST_np @ np.repeat(OUT_B_np, SF)

# ---- pack all 128-lane-wide constants into ONE array (one DMA) ----
R_W1 = 0
R_W2 = R_W1 + LANE_IN      # 128
R_EQ = R_W2 + LANE_F       # 256
R_EK = R_EQ + LANE_LV      # 288
R_WL = R_EK + LANE_LV      # 320
R_CV = R_WL + LANE_LV      # 352  (8 small constant rows)
N_WPACK = R_CV + 8         # 360

_wpack = np.zeros((N_WPACK, LANE_PAD), np.float64)
_wpack[R_W1:R_W1 + LANE_IN, :] = _W1
_wpack[R_W2:R_W2 + LANE_F, :] = _W2
_wpack[R_EQ:R_EQ + LANE_LV, :] = _EQ
_wpack[R_EK:R_EK + LANE_LV, :] = _EK
_wpack[R_WL:R_WL + LANE_LV, :] = _WL
_wpack[R_CV + 0, :] = _SH1
_wpack[R_CV + 1, :] = _BLAST
_wpack[R_CV + 2, :LANE_LV] = np.repeat(IN_W_np[:, 0], SF)   # wq per (h, s) lane
_wpack[R_CV + 3, :LANE_LV] = np.repeat(IN_B_np[:, 0], SF)   # bq
_wpack[R_CV + 4, :LANE_LV] = np.repeat(IN_W_np[:, 1], SF)   # wk
_wpack[R_CV + 5, :LANE_LV] = np.repeat(IN_B_np[:, 1], SF)   # bk
_wpack[R_CV + 6, :LANE_LV] = np.repeat(IN_W_np[:, 2], SF)   # wv
_wpack[R_CV + 7, :LANE_LV] = np.repeat(IN_B_np[:, 2], SF)   # bv
WPACK = jnp.asarray(_wpack, dtype=jnp.float32)               # (360, 128)

# ---- pack both 32-lane-wide pooling/reduction matrices into ONE array ----
_ppack = np.zeros((LANE_Y + LANE_SC, LANE_LV), np.float64)
_ppack[0:LANE_Y, :] = _P3
_ppack[LANE_Y:, :] = _SUMK
PPACK = jnp.asarray(_ppack, dtype=jnp.float32)                # (256, 32)


# ----------------------------- fused Pallas kernel ---------------------------

def fused_forward_kernel(x_ref, wpack_ref, ppack_ref, o_ref):
    x2 = x_ref[...]                                                   # (B, 128) = (b, bc*T+t)

    # small packed constants (aligned 8-row load, then cheap value slices)
    cv = wpack_ref[R_CV:R_CV + 8, :]                                  # (8, 128)
    sh1 = cv[0:1, :]
    blast = cv[1:2, :]
    wq = cv[2:3, 0:LANE_LV]; bq = cv[3:4, 0:LANE_LV]
    wk = cv[4:5, 0:LANE_LV]; bk = cv[5:6, 0:LANE_LV]
    wv = cv[6:7, 0:LANE_LV]; bv = cv[7:8, 0:LANE_LV]

    # ---- multi_conv: channel-select + grouped conv + loc add + folded BN + swish
    w1 = wpack_ref[R_W1:R_W1 + LANE_IN, :]
    pre = jnp.dot(x2, w1, preferred_element_type=jnp.float32) + sh1   # (B, 128) = (b, f*T+t)
    act = pre * jax.nn.sigmoid(pre)                                   # swish

    # ---- linear_all over the feature axis (bias cancels in the windowed variance)
    w2 = wpack_ref[R_W2:R_W2 + LANE_F, :]
    y = jnp.dot(act, w2, preferred_element_type=jnp.float32)          # (B, 128) = (b, h*T+t)

    # ---- LogVar over each stride window: one-pass variance, two independent dots
    p3 = ppack_ref[0:LANE_Y, :]
    s1 = jnp.dot(y, p3, preferred_element_type=jnp.float32)           # (B, 32) = (b, h*SF+s)
    s2 = jnp.dot(y * y, p3, preferred_element_type=jnp.float32)       # (B, 32)
    var = (s2 - s1 * s1 * (1.0 / SEG)) * (1.0 / (SEG - 1))            # unbiased (torch.var)
    lv = jnp.log(jnp.clip(var, 1e-6, 1e6))                            # (B, 32)

    # ---- per-feature MultiheadAttention (embed_dim=1, num_heads=1), all (b,h) at once
    q = lv * wq + bq
    k = lv * wk + bk
    v = lv * wv + bv                                                  # (B, 32)
    eq = wpack_ref[R_EQ:R_EQ + LANE_LV, :]
    ek = wpack_ref[R_EK:R_EK + LANE_LV, :]
    q_exp = jnp.dot(q, eq, preferred_element_type=jnp.float32)        # (B, 128) = (b, h,s,s')
    k_exp = jnp.dot(k, ek, preferred_element_type=jnp.float32)
    v_exp = jnp.dot(v, ek, preferred_element_type=jnp.float32)
    scores = q_exp * k_exp
    # row max is constant within every (b,h,s) softmax group -> exact stabilizing shift
    scores = scores - jnp.max(scores, axis=-1, keepdims=True)
    e = jnp.exp(scores)
    sumk = ppack_ref[LANE_Y:LANE_Y + LANE_SC, :]
    denom = jnp.dot(e, sumk, preferred_element_type=jnp.float32)      # (B, 32)
    num = jnp.dot(e * v_exp, sumk, preferred_element_type=jnp.float32)
    attn = num * pl.reciprocal(jnp.maximum(denom, 1e-30), approx=True)

    # ---- lastLayer: out_proj folded into constrained linear (lane-padded) + log-softmax
    wl = wpack_ref[R_WL:R_WL + LANE_LV, :]
    logits = jnp.dot(attn, wl, preferred_element_type=jnp.float32) + blast   # (B, 128)
    mx = jnp.max(logits, axis=-1, keepdims=True)
    lse = jnp.log(jnp.sum(jnp.exp(logits - mx), axis=-1, keepdims=True)) + mx
    o_ref[...] = logits - lse


# ----------------------------- forward wrapper --------------------------------

def forward(x):
    # free wrapper-side packing: (B, nBands, nChan, nTime) -> (B, nBands*nChan*nTime)
    x2 = x.reshape(B, LANE_IN)
    out_pad = pl.pallas_call(
        fused_forward_kernel,
        out_shape=jax.ShapeDtypeStruct((B, LANE_PAD), jnp.float32),
        in_specs=[pl.BlockSpec(memory_space=pltpu.MemorySpace.VMEM)] * 3,
        out_specs=pl.BlockSpec(memory_space=pltpu.MemorySpace.VMEM),
    )(x2, WPACK, PPACK)
    return out_pad[:, :NCLASS]


if __name__ == "__main__":
    x = jax.random.normal(jax.random.PRNGKey(0), (B, NBANDS, NCHAN, NTIME), jnp.float32)
    out = jax.jit(forward)(x)
    out = jax.block_until_ready(out)
    assert out.shape == (B, NCLASS)
    assert bool(jnp.all(jnp.isfinite(out)))
    # TODO(synk): training-mode BatchNorm (batch statistics) not modeled; eval-mode stats folded.
    print("KERNEL_OK")
</pallas_src>

<mosaic_0001>
module attributes {stable_mosaic.version = 11 : i64} {
  func.func @fused_forward_kernel(%arg0: memref<2x128xf32, #tpu.memory_space<vmem>>, %arg1: memref<360x128xf32, #tpu.memory_space<vmem>>, %arg2: memref<256x32xf32, #tpu.memory_space<vmem>>, %arg3: memref<2x128xf32, #tpu.memory_space<vmem>>) attributes {dimension_semantics = [], scalar_prefetch = 0 : i64, scratch_operands = 0 : i64, tpu.core_type = #tpu.core_type<tc>} {
    %c0 = arith.constant 0 : index
    %c0_0 = arith.constant 0 : index
    %0 = vector.load %arg0[%c0, %c0_0] : memref<2x128xf32, #tpu.memory_space<vmem>>, vector<2x128xf32>
    %c352 = arith.constant 352 : index
    %c0_1 = arith.constant 0 : index
    %1 = vector.load %arg1[%c352, %c0_1] : memref<360x128xf32, #tpu.memory_space<vmem>>, vector<8x128xf32>
    %2 = vector.extract_strided_slice %1 {offsets = [0, 0], sizes = [1, 128], strides = [1, 1]} : vector<8x128xf32> to vector<1x128xf32>
    %3 = vector.extract_strided_slice %1 {offsets = [1, 0], sizes = [1, 128], strides = [1, 1]} : vector<8x128xf32> to vector<1x128xf32>
    %4 = vector.extract_strided_slice %1 {offsets = [2, 0], sizes = [1, 32], strides = [1, 1]} : vector<8x128xf32> to vector<1x32xf32>
    %5 = vector.extract_strided_slice %1 {offsets = [3, 0], sizes = [1, 32], strides = [1, 1]} : vector<8x128xf32> to vector<1x32xf32>
    %6 = vector.extract_strided_slice %1 {offsets = [4, 0], sizes = [1, 32], strides = [1, 1]} : vector<8x128xf32> to vector<1x32xf32>
    %7 = vector.extract_strided_slice %1 {offsets = [5, 0], sizes = [1, 32], strides = [1, 1]} : vector<8x128xf32> to vector<1x32xf32>
    %8 = vector.extract_strided_slice %1 {offsets = [6, 0], sizes = [1, 32], strides = [1, 1]} : vector<8x128xf32> to vector<1x32xf32>
    %9 = vector.extract_strided_slice %1 {offsets = [7, 0], sizes = [1, 32], strides = [1, 1]} : vector<8x128xf32> to vector<1x32xf32>
    %c0_2 = arith.constant 0 : index
    %c0_3 = arith.constant 0 : index
    %10 = vector.load %arg1[%c0_2, %c0_3] : memref<360x128xf32, #tpu.memory_space<vmem>>, vector<128x128xf32>
    %cst = arith.constant dense<0.000000e+00> : vector<2x128xf32>
    %11 = tpu.matmul %0, %10, %cst {dimension_numbers = #tpu.dot_dimension_numbers<[1], [0], [0], [1], [0, 0, 1, 1], [], []>} : vector<2x128xf32>, vector<128x128xf32>, vector<2x128xf32> -> vector<2x128xf32>
    %12 = vector.broadcast %2 : vector<1x128xf32> to vector<2x128xf32>
    %13 = arith.addf %11, %12 : vector<2x128xf32>
    %14 = arith.negf %13 : vector<2x128xf32>
    %15 = math.exp %14 : vector<2x128xf32>
    %cst_4 = arith.constant 1.000000e+00 : f32
    %16 = vector.broadcast %cst_4 : f32 to vector<2x128xf32>
    %17 = arith.addf %16, %15 : vector<2x128xf32>
    %18 = arith.divf %16, %17 : vector<2x128xf32>
    %19 = arith.mulf %13, %18 : vector<2x128xf32>
    %c128 = arith.constant 128 : index
    %c0_5 = arith.constant 0 : index
    %20 = vector.load %arg1[%c128, %c0_5] : memref<360x128xf32, #tpu.memory_space<vmem>>, vector<128x128xf32>
    %cst_6 = arith.constant dense<0.000000e+00> : vector<2x128xf32>
    %21 = tpu.matmul %19, %20, %cst_6 {dimension_numbers = #tpu.dot_dimension_numbers<[1], [0], [0], [1], [0, 0, 1, 1], [], []>} : vector<2x128xf32>, vector<128x128xf32>, vector<2x128xf32> -> vector<2x128xf32>
    %c0_7 = arith.constant 0 : index
    %c0_8 = arith.constant 0 : index
    %22 = vector.load %arg2[%c0_7, %c0_8] : memref<256x32xf32, #tpu.memory_space<vmem>>, vector<128x32xf32>
    %cst_9 = arith.constant dense<0.000000e+00> : vector<2x32xf32>
    %23 = tpu.matmul %21, %22, %cst_9 {dimension_numbers = #tpu.dot_dimension_numbers<[1], [0], [0], [1], [0, 0, 1, 1], [], []>} : vector<2x128xf32>, vector<128x32xf32>, vector<2x32xf32> -> vector<2x32xf32>
    %24 = arith.mulf %21, %21 : vector<2x128xf32>
    %cst_10 = arith.constant dense<0.000000e+00> : vector<2x32xf32>
    %25 = tpu.matmul %24, %22, %cst_10 {dimension_numbers = #tpu.dot_dimension_numbers<[1], [0], [0], [1], [0, 0, 1, 1], [], []>} : vector<2x128xf32>, vector<128x32xf32>, vector<2x32xf32> -> vector<2x32xf32>
    %26 = arith.mulf %23, %23 : vector<2x32xf32>
    %cst_11 = arith.constant 2.500000e-01 : f32
    %27 = vector.broadcast %cst_11 : f32 to vector<2x32xf32>
    %28 = arith.mulf %26, %27 : vector<2x32xf32>
    %29 = arith.subf %25, %28 : vector<2x32xf32>
    %cst_12 = arith.constant 0.333333343 : f32
    %30 = vector.broadcast %cst_12 : f32 to vector<2x32xf32>
    %31 = arith.mulf %29, %30 : vector<2x32xf32>
    %cst_13 = arith.constant 9.99999997E-7 : f32
    %cst_14 = arith.constant 1.000000e+06 : f32
    %32 = vector.broadcast %cst_13 : f32 to vector<2x32xf32>
    %33 = arith.maximumf %32, %31 : vector<2x32xf32>
    %34 = vector.broadcast %cst_14 : f32 to vector<2x32xf32>
    %35 = arith.minimumf %34, %33 : vector<2x32xf32>
    %36 = math.log %35 : vector<2x32xf32>
    %37 = vector.broadcast %4 : vector<1x32xf32> to vector<2x32xf32>
    %38 = arith.mulf %36, %37 : vector<2x32xf32>
    %39 = vector.broadcast %5 : vector<1x32xf32> to vector<2x32xf32>
    %40 = arith.addf %38, %39 : vector<2x32xf32>
    %41 = vector.broadcast %6 : vector<1x32xf32> to vector<2x32xf32>
    %42 = arith.mulf %36, %41 : vector<2x32xf32>
    %43 = vector.broadcast %7 : vector<1x32xf32> to vector<2x32xf32>
    %44 = arith.addf %42, %43 : vector<2x32xf32>
    %45 = vector.broadcast %8 : vector<1x32xf32> to vector<2x32xf32>
    %46 = arith.mulf %36, %45 : vector<2x32xf32>
    %47 = vector.broadcast %9 : vector<1x32xf32> to vector<2x32xf32>
    %48 = arith.addf %46, %47 : vector<2x32xf32>
    %c256 = arith.constant 256 : index
    %c0_15 = arith.constant 0 : index
    %49 = vector.load %arg1[%c256, %c0_15] : memref<360x128xf32, #tpu.memory_space<vmem>>, vector<32x128xf32>
    %c288 = arith.constant 288 : index
    %c0_16 = arith.constant 0 : index
    %50 = vector.load %arg1[%c288, %c0_16] : memref<360x128xf32, #tpu.memory_space<vmem>>, vector<32x128xf32>
    %cst_17 = arith.constant dense<0.000000e+00> : vector<2x128xf32>
    %51 = tpu.matmul %40, %49, %cst_17 {dimension_numbers = #tpu.dot_dimension_numbers<[1], [0], [0], [1], [0, 0, 1, 1], [], []>} : vector<2x32xf32>, vector<32x128xf32>, vector<2x128xf32> -> vector<2x128xf32>
    %cst_18 = arith.constant dense<0.000000e+00> : vector<2x128xf32>
    %52 = tpu.matmul %44, %50, %cst_18 {dimension_numbers = #tpu.dot_dimension_numbers<[1], [0], [0], [1], [0, 0, 1, 1], [], []>} : vector<2x32xf32>, vector<32x128xf32>, vector<2x128xf32> -> vector<2x128xf32>
    %cst_19 = arith.constant dense<0.000000e+00> : vector<2x128xf32>
    %53 = tpu.matmul %48, %50, %cst_19 {dimension_numbers = #tpu.dot_dimension_numbers<[1], [0], [0], [1], [0, 0, 1, 1], [], []>} : vector<2x32xf32>, vector<32x128xf32>, vector<2x128xf32> -> vector<2x128xf32>
    %54 = arith.mulf %51, %52 : vector<2x128xf32>
    %cst_20 = arith.constant dense<0xFF800000> : vector<2xf32>
    %55 = vector.multi_reduction <maximumf>, %54, %cst_20 [1] : vector<2x128xf32> to vector<2xf32>
    %56 = vector.shape_cast %55 : vector<2xf32> to vector<2x1xf32>
    %57 = vector.broadcast %56 : vector<2x1xf32> to vector<2x128xf32>
    %58 = arith.subf %54, %57 : vector<2x128xf32>
    %59 = math.exp %58 : vector<2x128xf32>
    %c128_21 = arith.constant 128 : index
    %c0_22 = arith.constant 0 : index
    %60 = vector.load %arg2[%c128_21, %c0_22] : memref<256x32xf32, #tpu.memory_space<vmem>>, vector<128x32xf32>
    %cst_23 = arith.constant dense<0.000000e+00> : vector<2x32xf32>
    %61 = tpu.matmul %59, %60, %cst_23 {dimension_numbers = #tpu.dot_dimension_numbers<[1], [0], [0], [1], [0, 0, 1, 1], [], []>} : vector<2x128xf32>, vector<128x32xf32>, vector<2x32xf32> -> vector<2x32xf32>
    %62 = arith.mulf %59, %53 : vector<2x128xf32>
    %cst_24 = arith.constant dense<0.000000e+00> : vector<2x32xf32>
    %63 = tpu.matmul %62, %60, %cst_24 {dimension_numbers = #tpu.dot_dimension_numbers<[1], [0], [0], [1], [0, 0, 1, 1], [], []>} : vector<2x128xf32>, vector<128x32xf32>, vector<2x32xf32> -> vector<2x32xf32>
    %cst_25 = arith.constant 1.000000e-30 : f32
    %64 = vector.broadcast %cst_25 : f32 to vector<2x32xf32>
    %65 = arith.maximumf %61, %64 : vector<2x32xf32>
    %66 = tpu.reciprocal %65 {approx = true} : vector<2x32xf32> -> vector<2x32xf32>
    %67 = arith.mulf %63, %66 : vector<2x32xf32>
    %c320 = arith.constant 320 : index
    %c0_26 = arith.constant 0 : index
    %68 = vector.load %arg1[%c320, %c0_26] : memref<360x128xf32, #tpu.memory_space<vmem>>, vector<32x128xf32>
    %cst_27 = arith.constant dense<0.000000e+00> : vector<2x128xf32>
    %69 = tpu.matmul %67, %68, %cst_27 {dimension_numbers = #tpu.dot_dimension_numbers<[1], [0], [0], [1], [0, 0, 1, 1], [], []>} : vector<2x32xf32>, vector<32x128xf32>, vector<2x128xf32> -> vector<2x128xf32>
    %70 = vector.broadcast %3 : vector<1x128xf32> to vector<2x128xf32>
    %71 = arith.addf %69, %70 : vector<2x128xf32>
    %cst_28 = arith.constant dense<0xFF800000> : vector<2xf32>
    %72 = vector.multi_reduction <maximumf>, %71, %cst_28 [1] : vector<2x128xf32> to vector<2xf32>
    %73 = vector.shape_cast %72 : vector<2xf32> to vector<2x1xf32>
    %74 = vector.broadcast %73 : vector<2x1xf32> to vector<2x128xf32>
    %75 = arith.subf %71, %74 : vector<2x128xf32>
    %76 = math.exp %75 : vector<2x128xf32>
    %cst_29 = arith.constant dense<0.000000e+00> : vector<2xf32>
    %77 = vector.multi_reduction <add>, %76, %cst_29 [1] : vector<2x128xf32> to vector<2xf32>
    %78 = vector.shape_cast %77 : vector<2xf32> to vector<2x1xf32>
    %79 = math.log %78 : vector<2x1xf32>
    %80 = arith.addf %79, %73 : vector<2x1xf32>
    %81 = vector.broadcast %80 : vector<2x1xf32> to vector<2x128xf32>
    %82 = arith.subf %71, %81 : vector<2x128xf32>
    %c0_30 = arith.constant 0 : index
    %c0_31 = arith.constant 0 : index
    %83 = vector.load %arg3[%c0_30, %c0_31] : memref<2x128xf32, #tpu.memory_space<vmem>>, vector<2x128xf32>
    tpu.vector_store %arg3[%c0_30, %c0_31], %82 {strides = array<i32>} : memref<2x128xf32, #tpu.memory_space<vmem>>, vector<2x128xf32>,
    return
  }
}

</mosaic_0001>

<bundles_post_ra>
// kernel: forward.1
= control target key start
LH: loop header
LB: loop body
LE: loop exit
PB: predicated region body
PF: predicated region fallthrough
CT: control target
= control target key end

     0   :  { %8 = vsyncpa [#allocation3], 0  ;;  %s1743_s0 = inlined_call_operand.vmem [shape: f32[2,128], index: 0, kind: input, shape index: {}]   ;;  %s1744_s1 = inlined_call_operand.hbm [shape: f32[360,128], index: 1, kind: input, shape index: {}]   ;;  %s1745_s2 = inlined_call_operand.hbm [shape: f32[256,32], index: 2, kind: input, shape index: {}]   ;;  %s1746_s3 = inlined_call_operand.hbm [shape: f32[2,128], index: 3, kind: output, shape index: {}]  }
   0x1   :  { %9 = vsyncpa [#allocation6], 0 }
   0x2   :  { %10 = vsyncpa [#allocation4], 0  ;;  %s1573_s12 = smov [#allocation2]   ;;  %s1501_s16 = scalar_lea.hbm %s1744_s1, 5760 }
   0x3   :  { %s18_s13 = sshll.u32 %s1573_s12, 4  ;;  %p1502_p0 = scmp.ne.s32.totalorder %s1744_s1, %s1501_s16  ;;  %s19_s13 = int_to_ptr.vmem [resolvable:$true] %s18_s13 }
   0x4   :  { %p1505_p1 = scmp.lt.u32.totalorder %s1501_s16, %s1744_s1 }
   0x6   :  { %p1507_p2 = pnand %p1505_p1, %p1502_p0 }
   0x8   :  { %1510 = shalt.err (!%p1507_p2)
}
   0x9   :  { %s1511_s21 = scalar_lea.vmem %s19_s13, 5760  ;;  %p1516_p4 = scmp.lt.s32.totalorder %s19_s13, %s19_s13 }
   0xa   :  { %p1512_p3 = scmp.ne.s32.totalorder %s19_s13, %s1511_s21  ;;  %p1517_p5 = scmp.lt.s32.totalorder %s1511_s21, %s1511_s21 }
   0xc   :  { %p1518_p6 = por %p1517_p5, %p1516_p4 }
   0xe   :  { %p1519_p7 = pnand %p1518_p6, %p1512_p3 }
  0x10   :  { %1522 = shalt.err (!%p1519_p7)
}
  0x11   :  { %s1574_s22 = smov 128   ;;  %s1575_s23 = smov 8  }
  0x12   :  { %24 = dma.hbm_to_vmem [thread:$0]  %s1744_s1, 5760, %s19_s13, [#allocation3], %s1574_s22, %s1574_s22, %s1575_s23  }
  0x13   :  { %s1576_s26 = smov [#allocation5]   ;;  %s1523_s30 = scalar_lea.hbm %s1745_s2, 4096 }
  0x14   :  { %s30_s27 = sshll.u32 %s1576_s26, 4  ;;  %p1524_p8 = scmp.ne.s32.totalorder %s1745_s2, %s1523_s30  ;;  %s31_s27 = int_to_ptr.vmem [resolvable:$true] %s30_s27 }
  0x15   :  { %p1527_p9 = scmp.lt.u32.totalorder %s1523_s30, %s1745_s2 }
  0x17   :  { %p1529_p10 = pnand %p1527_p9, %p1524_p8 }
  0x19   :  { %1532 = shalt.err (!%p1529_p10)
}
  0x1a   :  { %s1533_s8 = scalar_lea.vmem %s31_s27, 4096  ;;  %p1538_p12 = scmp.lt.s32.totalorder %s31_s27, %s31_s27 }
  0x1b   :  { %p1534_p11 = scmp.ne.s32.totalorder %s31_s27, %s1533_s8  ;;  %p1539_p13 = scmp.lt.s32.totalorder %s1533_s8, %s1533_s8 }
  0x1d   :  { %p1540_p0 = por %p1539_p13, %p1538_p12 }
  0x1f   :  { %p1541_p1 = pnand %p1540_p0, %p1534_p11 }
  0x21   :  { %1544 = shalt.err (!%p1541_p1)
}
  0x22   :  { %36 = dma.hbm_to_vmem [thread:$0]  %s1745_s2, 4096, %s31_s27, [#allocation6], %s1574_s22, %s1574_s22, %s1575_s23  }
  0x23   :  { %1567 = dma.done.wait [#allocation3], 5760  }
  0x24   :  { %1568 = vsyncadd [#allocation3], 4294961536 }
  0x25   :  { %1569 = dma.done.wait [#allocation6], 4096  }
  0x26   :  { %1570 = vsyncadd [#allocation6], 4294963200  ;;  %v1577_v0 = vmov 0.0|0.0   ;;  %vm1578_vm0 = vmmov 0   ;;  %v1579_v1 = vmov 0.0   ;;  %v45_v2 = vld [vmem:[#allocation2] sm:$0xff] }
  0x27   :  { %1311 = vmatprep.subr.bf16.mxu0 %v1577_v0  ;;  %1089 = vmatprep.mubr.msk.f32.mxu0 %vm1578_vm0, %v1579_v1  ;;  %v46_v3 = vld [vmem:[#allocation2 + $0x8] sm:$0xff]  ;;  %v47_v4 = vld [vmem:[#allocation2 + $0x10] sm:$0xff]  ;;  %v48_v6 = vld [vmem:[#allocation2 + $0x18] sm:$0xff]  ;;  %vm431_vm1 = vcmask 261120   ;;  %vm652_vm2 = vcmask 1041408  }
  0x28   :  { %1335 = vmatprep.subr.bf16.mxu1 %v1577_v0  ;;  %1124 = vmatprep.mubr.msk.f32.mxu1 %vm1578_vm0, %v1579_v1  ;;  %v1312_v5 = vpack.c.bf16 %v46_v3, %v45_v2  ;;  %v1315_v7 = vpack.c.bf16 %v48_v6, %v47_v4  ;;  %v49_v8 = vld [vmem:[#allocation2 + $0x20] sm:$0xff]  ;;  %v50_v9 = vld [vmem:[#allocation2 + $0x28] sm:$0xff]  ;;  %v51_v11 = vld [vmem:[#allocation2 + $0x30] sm:$0xff] }
  0x29   :  { %v1318_v10 = vpack.c.bf16 %v50_v9, %v49_v8  ;;  %v52_v12 = vld [vmem:[#allocation2 + $0x38] sm:$0xff]  ;;  %v53_v14 = vld [vmem:[#allocation2 + $0x40] sm:$0xff]  ;;  %v54_v15 = vld [vmem:[#allocation2 + $0x48] sm:$0xff] }
  0x2a   :  { %1313 = vmatpush3.bf16.msra.mxu0 %v1312_v5  ;;  %v1321_v13 = vpack.c.bf16 %v52_v12, %v51_v11  ;;  %v1324_v16 = vpack.c.bf16 %v54_v15, %v53_v14  ;;  %v55_v17 = vld [vmem:[#allocation2 + $0x50] sm:$0xff]  ;;  %v56_v18 = vld [vmem:[#allocation2 + $0x58] sm:$0xff]  ;;  %v57_v20 = vld [vmem:[#allocation2 + $0x60] sm:$0xff] }
  0x2b   :  { %1314 = vmatprep.subr.bf16.mxu0 %v1577_v0  ;;  %v1327_v19 = vpack.c.bf16 %v56_v18, %v55_v17  ;;  %v58_v21 = vld [vmem:[#allocation2 + $0x68] sm:$0xff]  ;;  %v59_v23 = vld [vmem:[#allocation2 + $0x70] sm:$0xff]  ;;  %v60_v24 = vld [vmem:[#allocation2 + $0x78] sm:$0xff] }
  0x2c   :  { %v1330_v22 = vpack.c.bf16 %v58_v21, %v57_v20  ;;  %v1333_v25 = vpack.c.bf16 %v60_v24, %v59_v23  ;;  %v43_v26 = vld [vmem:[%s1743_s0] sm:$0x3]  ;;  %v143_v28 = vld [vmem:[#allocation2 + $0x88] sm:$0xff]  ;;  %v144_v30 = vld [vmem:[#allocation2 + $0x90] sm:$0xff]  ;;  %s1580_s0 = smov [#allocation7]  }
  0x2d   :  { %v142_v27 = vld [vmem:[#allocation2 + $0x80] sm:$0xff]  ;;  %v145_v31 = vld [vmem:[#allocation2 + $0x98] sm:$0xff]  ;;  %v147_v34 = vld [vmem:[#allocation2 + $0xa8] sm:$0xff]  ;;  %s920_s11 = sshll.u32 %s1580_s0, 4  ;;  %s921_s11 = int_to_ptr.vmem [resolvable:$true] %s920_s11 }
  0x2e   :  { %1316 = vmatpush3.bf16.msra.mxu0 %v1315_v7  ;;  %v1336_v29 = vpack.c.bf16 %v143_v28, %v142_v27  ;;  %v1339_v32 = vpack.c.bf16 %v145_v31, %v144_v30  ;;  %v146_v33 = vld [vmem:[#allocation2 + $0xa0] sm:$0xff]  ;;  %v148_v36 = vld [vmem:[#allocation2 + $0xb0] sm:$0xff]  ;;  %v149_v37 = vld [vmem:[#allocation2 + $0xb8] sm:$0xff]  ;;  %s1545_s12 = scalar_lea.vmem %s921_s11, 32  ;;  %p1550_p3 = scmp.lt.s32.totalorder %s921_s11, %s921_s11 }
  0x2f   :  { %1317 = vmatprep.subr.bf16.mxu0 %v1577_v0  ;;  %v1342_v35 = vpack.c.bf16 %v147_v34, %v146_v33  ;;  %v1345_v38 = vpack.c.bf16 %v149_v37, %v148_v36  ;;  %v150_v39 = vld [vmem:[#allocation2 + $0xc0] sm:$0xff]  ;;  %v151_v40 = vld [vmem:[#allocation2 + $0xc8] sm:$0xff]  ;;  %v152_v42 = vld [vmem:[#allocation2 + $0xd0] sm:$0xff]  ;;  %p1546_p2 = scmp.ne.s32.totalorder %s921_s11, %s1545_s12  ;;  %p1551_p4 = scmp.lt.s32.totalorder %s1545_s12, %s1545_s12 }
  0x30   :  { %1337 = vmatpush3.bf16.msra.mxu1 %v1336_v29  ;;  %v1348_v41 = vpack.c.bf16 %v151_v40, %v150_v39  ;;  %v153_v43 = vld [vmem:[#allocation2 + $0xd8] sm:$0xff]  ;;  %v154_v45 = vld [vmem:[#allocation2 + $0xe0] sm:$0xff]  ;;  %v155_v46 = vld [vmem:[#allocation2 + $0xe8] sm:$0xff] }
  0x31   :  { %1338 = vmatprep.subr.bf16.mxu1 %v1577_v0  ;;  %v1351_v44 = vpack.c.bf16 %v153_v43, %v152_v42  ;;  %v1354_v47 = vpack.c.bf16 %v155_v46, %v154_v45  ;;  %v156_v48 = vld [vmem:[#allocation2 + $0xf0] sm:$0xff]  ;;  %v157_v49 = vld [vmem:[#allocation2 + $0xf8] sm:$0xff]  ;;  %v228_v51 = vld [vmem:[#allocation5] sm:$0xff]  ;;  %p1552_p5 = por %p1551_p4, %p1550_p3 }
  0x32   :  { %1319 = vmatpush3.bf16.msra.mxu0 %v1318_v10  ;;  %v1357_v50 = vpack.c.bf16 %v157_v49, %v156_v48  ;;  %v229_v52 = vld [vmem:[#allocation5 + $0x8] sm:$0xff]  ;;  %v230_v54 = vld [vmem:[#allocation5 + $0x10] sm:$0xff]  ;;  %v231_v55 = vld [vmem:[#allocation5 + $0x18] sm:$0xff] }
  0x33   :  { %1320 = vmatprep.subr.bf16.mxu0 %v1577_v0  ;;  %v1360_v53 = vpack.c.bf16 %v229_v52, %v228_v51  ;;  %v1363_v56 = vpack.c.bf16 %v231_v55, %v230_v54  ;;  %v232_v57 = vld [vmem:[#allocation5 + $0x20] sm:$0xff]  ;;  %v233_v58 = vld [vmem:[#allocation5 + $0x28] sm:$0xff]  ;;  %v234_v60 = vld [vmem:[#allocation5 + $0x30] sm:$0xff]  ;;  %p1553_p6 = pnand %p1552_p5, %p1546_p2 }
  0x34   :  { %1340 = vmatpush3.bf16.msra.mxu1 %v1339_v32  ;;  %v1366_v59 = vpack.c.bf16 %v233_v58, %v232_v57  ;;  %v235_v61 = vld [vmem:[#allocation5 + $0x38] sm:$0xff]  ;;  %v236_v63 = vld [vmem:[#allocation5 + $0x40] sm:$0xff]  ;;  %v237_v2 = vld [vmem:[#allocation5 + $0x48] sm:$0xff] }
  0x35   :  { %1341 = vmatprep.subr.bf16.mxu1 %v1577_v0  ;;  %v1369_v62 = vpack.c.bf16 %v235_v61, %v234_v60  ;;  %v1372_v3 = vpack.c.bf16 %v237_v2, %v236_v63  ;;  %v238_v4 = vld [vmem:[#allocation5 + $0x50] sm:$0xff]  ;;  %v239_v5 = vld [vmem:[#allocation5 + $0x58] sm:$0xff]  ;;  %v240_v7 = vld [vmem:[#allocation5 + $0x60] sm:$0xff] }
  0x36   :  { %1322 = vmatpush3.bf16.msra.mxu0 %v1321_v13  ;;  %v1375_v6 = vpack.c.bf16 %v239_v5, %v238_v4  ;;  %v241_v8 = vld [vmem:[#allocation5 + $0x68] sm:$0xff]  ;;  %v242_v10 = vld [vmem:[#allocation5 + $0x70] sm:$0xff]  ;;  %v243_v11 = vld [vmem:[#allocation5 + $0x78] sm:$0xff]  ;;  %v61_v13 = vlaneseq }
  0x37   :  { %1323 = vmatprep.subr.bf16.mxu0 %v1577_v0  ;;  %v1378_v9 = vpack.c.bf16 %v241_v8, %v240_v7  ;;  %v1381_v12 = vpack.c.bf16 %v243_v11, %v242_v10  ;;  %v423_v29 = vld [vmem:[#allocation2 + $0x100] sm:$0xff]  ;;  %v424_v30 = vld [vmem:[#allocation2 + $0x108] sm:$0xff]  ;;  %v426_v36 = vld [vmem:[#allocation2 + $0x118] sm:$0xff] }
  0x38   :  { %1343 = vmatpush3.bf16.msra.mxu1 %v1342_v35  ;;  %v1660_v14 = vshrl.u32 %v61_v13, 7  ;;  %v1408_v31 = vpack.c.bf16 %v424_v30, %v423_v29  ;;  %v427_v32 = vld [vmem:[#allocation2 + $0x120] sm:$0xff]  ;;  %v428_v33 = vld [vmem:[#allocation2 + $0x128] sm:$0xff]  ;;  %v425_v35 = vld [vmem:[#allocation2 + $0x110] sm:$0xff] }
  0x39   :  { %1344 = vmatprep.subr.bf16.mxu1 %v1577_v0  ;;  %v1414_v34 = vpack.c.bf16 %v428_v33, %v427_v32  ;;  %v429_v37 = vld [vmem:[#allocation2 + $0x130] sm:$0xff]  ;;  %v1411_v39 = vpack.c.bf16 %v426_v36, %v425_v35  ;;  %v661_v11 = vld [vmem:[#allocation5 + $0x90] sm:$0xff]  ;;  %v662_v13 = vld [vmem:[#allocation5 + $0x98] sm:$0xff] }
  0x3a   :  { %1325 = vmatpush3.bf16.msra.mxu0 %v1324_v16  ;;  %v63_v15 = vsub.s32 0, %v1660_v14  ;;  %v1663_v16 = vld [vmem:[#allocation2 + $0x160] sm:$0xff]  ;;  %v395_v51 = vsub.s32 2, %v1660_v14  ;;  %v405_v52 = vsub.s32 4, %v1660_v14  ;;  %v410_v54 = vsub.s32 5, %v1660_v14  ;;  %v660_v10 = vld [vmem:[#allocation5 + $0x88] sm:$0xff] }
  0x3b   :  { %1326 = vmatprep.subr.bf16.mxu0 %v1577_v0  ;;  %v415_v61 = vsub.s32 6, %v1660_v14  ;;  %v420_v5 = vsub.s32 7, %v1660_v14  ;;  %v668_v32 = vld [vmem:[#allocation5 + $0xc8] sm:$0xff]  ;;  %v670_v35 = vld [vmem:[#allocation5 + $0xd8] sm:$0xff] }
  0x3c   :  { %1346 = vmatpush3.bf16.msra.mxu1 %v1345_v38  ;;  %v64_v17 = vrot.slane %v1663_v16, %v63_v15  ;;  %v430_v38 = vld [vmem:[#allocation2 + $0x138] sm:$0xff]  ;;  %v396_v55 = vrot.slane %v1663_v16, %v395_v51  ;;  %v411_v60 = vrot.slane %v1663_v16, %v410_v54  ;;  %v1429_v15 = vpack.c.bf16 %v662_v13, %v661_v11  ;;  %v821_v51 = vld [vmem:[#allocation2 + $0x150] sm:$0xff] }
  0x3d   :  { %1347 = vmatprep.subr.bf16.mxu1 %v1577_v0  ;;  %v1417_v40 = vpack.c.bf16 %v430_v38, %v429_v37  ;;  %v416_v4 = vrot.slane %v1663_v16, %v415_v61  ;;  %v421_v7 = vrot.slane %v1663_v16, %v420_v5  ;;  %v671_v37 = vld [vmem:[#allocation5 + $0xe0] sm:$0xff]  ;;  %v672_v38 = vld [vmem:[#allocation5 + $0xe8] sm:$0xff] }
  0x3e   :  { %1328 = vmatpush3.bf16.msra.mxu0 %v1327_v19 }
  0x3f   :  { %1329 = vmatprep.subr.bf16.mxu0 %v1577_v0 }
  0x40   :  { %1349 = vmatpush3.bf16.msra.mxu1 %v1348_v41 }
  0x41   :  { %1350 = vmatprep.subr.bf16.mxu1 %v1577_v0 }
  0x42   :  { %1331 = vmatpush3.bf16.msra.mxu0 %v1330_v22 }
  0x43   :  { %1332 = vmatprep.subr.bf16.mxu0 %v1577_v0 }
  0x44   :  { %1352 = vmatpush3.bf16.msra.mxu1 %v1351_v44 }
  0x45   :  { %1353 = vmatprep.subr.bf16.mxu1 %v1577_v0 }
  0x46   :  { %1334 = vmatpush3.bf16.msra.mxu0 %v1333_v25 }
  0x47   :  { %1359 = vmatprep.subr.bf16.mxu0 %v1577_v0 }
  0x48   :  { %1355 = vmatpush3.bf16.msra.mxu1 %v1354_v47 }
  0x49   :  { %1090 = vmatmul.mubr.f32.vlgmr.msra.gmra.mrb[0].mxu0 %v43_v26  ;;  %1356 = vmatprep.subr.bf16.mxu1 %v1577_v0 }
  0x4a   :  { %1159 = vmatprep.mubr.msk.f32.mxu0 %vm1578_vm0, %v1579_v1  ;;  %1361 = vmatpush3.bf16.msra.mxu0 %v1360_v53 }
  0x4b   :  { %1362 = vmatprep.subr.bf16.mxu0 %v1577_v0 }
  0x4c   :  { %1358 = vmatpush3.bf16.msra.mxu1 %v1357_v50 }
  0x4d   :  { %1383 = vmatprep.subr.bf16.mxu1 %v1577_v0 }
  0x4e   :  { %1364 = vmatpush3.bf16.msra.mxu0 %v1363_v56 }
  0x4f   :  { %1365 = vmatprep.subr.bf16.mxu0 %v1577_v0 }
  0x52   :  { %1367 = vmatpush3.bf16.msra.mxu0 %v1366_v59 }
  0x53   :  { %1368 = vmatprep.subr.bf16.mxu0 %v1577_v0 }
  0x56   :  { %1370 = vmatpush3.bf16.msra.mxu0 %v1369_v62 }
  0x57   :  { %1371 = vmatprep.subr.bf16.mxu0 %v1577_v0 }
  0x5a   :  { %1373 = vmatpush3.bf16.msra.mxu0 %v1372_v3 }
  0x5b   :  { %1374 = vmatprep.subr.bf16.mxu0 %v1577_v0 }
  0x5e   :  { %1376 = vmatpush3.bf16.msra.mxu0 %v1375_v6 }
  0x5f   :  { %1377 = vmatprep.subr.bf16.mxu0 %v1577_v0 }
  0x62   :  { %1379 = vmatpush3.bf16.msra.mxu0 %v1378_v9 }
  0x63   :  { %1380 = vmatprep.subr.bf16.mxu0 %v1577_v0 }
  0x66   :  { %1382 = vmatpush3.bf16.msra.mxu0 %v1381_v12 }
  0x67   :  { %1407 = vmatprep.subr.bf16.mxu0 %v1577_v0 }
 0x11c   :  { %v131_v18 = vpop.f32.mrb[0].mxu0 }
 0x11d   :  { %v132_v19 = vadd.f32 %v131_v18, %v64_v17  ;;  %v1091_v20 = vpop.f32.mrb[1].mxu0  ;;  %v663_v17 = vld [vmem:[#allocation5 + $0xa0] sm:$0xff]  ;;  %v664_v18 = vld [vmem:[#allocation5 + $0xa8] sm:$0xff] }
 0x11e   :  { %v665_v20 = vld [vmem:[#allocation5 + $0xb0] sm:$0xff] }
 0x11f   :  { %v930_v21 = vmul.f32 -1.442695, %v132_v19 }
 0x121   :  { %1487 = vpow2.f32 %v930_v21  ;;  %v666_v21 = vld [vmem:[#allocation5 + $0xb8] sm:$0xff] }
 0x12b   :  { %v1488_v22 = vpop.eup %1487 }
 0x12c   :  { %v138_v23 = vadd.f32 1.0, %v1488_v22  ;;  %v1435_v22 = vpack.c.bf16 %v666_v21, %v665_v20 }
 0x12e   :  { %1489 = vrcp.f32 %v138_v23 }
 0x138   :  { %v1490_v24 = vpop.eup %1489 }
 0x139   :  { %v141_v25 = vmul.f32 %v1490_v24, %v132_v19  ;;  %v1432_v19 = vpack.c.bf16 %v664_v18, %v663_v17 }
 0x13b   :  { %1125 = vmatmul.mubr.f32.vlgmr.msra.gmra.mrb[0].mxu1 %v141_v25 }
 0x13c   :  { %1385 = vmatpush3.bf16.msra.mxu1 %v1360_v53  ;;  %1194 = vmatprep.mubr.msk.f32.mxu1 %vm1578_vm0, %v1579_v1  ;;  %v400_v53 = vsub.s32 3, %v1660_v14 }
 0x13d   :  { %1386 = vmatprep.subr.bf16.mxu1 %v1577_v0 }
 0x140   :  { %1388 = vmatpush3.bf16.msra.mxu1 %v1363_v56  ;;  %v406_v56 = vrot.slane %v1663_v16, %v405_v52  ;;  %v822_v52 = vld [vmem:[#allocation2 + $0x158] sm:$0xff] }
 0x141   :  { %1389 = vmatprep.subr.bf16.mxu1 %v1577_v0 }
 0x144   :  { %1391 = vmatpush3.bf16.msra.mxu1 %v1366_v59  ;;  %v401_v59 = vrot.slane %v1663_v16, %v400_v53  ;;  %v1477_v53 = vpack.c.bf16 %v822_v52, %v821_v51 }
 0x145   :  { %1392 = vmatprep.subr.bf16.mxu1 %v1577_v0 }
 0x148   :  { %1394 = vmatpush3.bf16.msra.mxu1 %v1369_v62 }
 0x149   :  { %1395 = vmatprep.subr.bf16.mxu1 %v1577_v0 }
 0x14c   :  { %1397 = vmatpush3.bf16.msra.mxu1 %v1372_v3 }
 0x14d   :  { %1398 = vmatprep.subr.bf16.mxu1 %v1577_v0 }
 0x150   :  { %1400 = vmatpush3.bf16.msra.mxu1 %v1375_v6 }
 0x151   :  { %1401 = vmatprep.subr.bf16.mxu1 %v1577_v0 }
 0x154   :  { %1403 = vmatpush3.bf16.msra.mxu1 %v1378_v9  ;;  %v659_v9 = vld [vmem:[#allocation5 + $0x80] sm:$0xff] }
 0x155   :  { %1404 = vmatprep.subr.bf16.mxu1 %v1577_v0 }
 0x158   :  { %1406 = vmatpush3.bf16.msra.mxu1 %v1381_v12  ;;  %v1426_v12 = vpack.c.bf16 %v660_v10, %v659_v9 }
 0x159   :  { %1413 = vmatprep.subr.bf16.mxu1 %v1577_v0 }
 0x20e   :  { %v224_v26 = vpop.f32.mrb[0].mxu1 }
 0x20f   :  { %v314_v27 = vmul.f32 %v224_v26, %v224_v26  ;;  %v1126_v28 = vpop.f32.mrb[1].mxu1  ;;  %1160 = vmatmul.mubr.f32.vlgmr.msra.gmra.mrb[2].mxu0 %v224_v26 }
 0x210   :  { %1205 = vmatprep.mubr.msk.f32.mxu0 %vm1578_vm0, %v1579_v1  ;;  %1409 = vmatpush3.bf16.msra.mxu0 %v1408_v31  ;;  %v667_v31 = vld [vmem:[#allocation5 + $0xc0] sm:$0xff] }
 0x211   :  { %1195 = vmatmul.mubr.f32.vlgmr.msra.gmra.mrb[2].mxu1 %v314_v27  ;;  %1410 = vmatprep.subr.bf16.mxu0 %v1577_v0  ;;  %v1438_v33 = vpack.c.bf16 %v668_v32, %v667_v31 }
 0x212   :  { %1216 = vmatprep.mubr.msk.f32.mxu1 %vm1578_vm0, %v1579_v1  ;;  %1415 = vmatpush3.bf16.msra.mxu1 %v1414_v34 }
 0x213   :  { %1416 = vmatprep.subr.bf16.mxu1 %v1577_v0 }
 0x214   :  { %1412 = vmatpush3.bf16.msra.mxu0 %v1411_v39  ;;  %v1444_v39 = vpack.c.bf16 %v672_v38, %v671_v37 }
 0x215   :  { %1419 = vmatprep.subr.bf16.mxu0 %v1577_v0 }
 0x216   :  { %1418 = vmatpush3.bf16.msra.mxu1 %v1417_v40 }
 0x217   :  { %1425 = vmatprep.subr.bf16.mxu1 %v1577_v0 }
 0x2e2   :  { %v310_v41 = vpop.f32.mrb[2].mxu0 }
 0x2e3   :  { %v385_v42 = vmul.f32 %v310_v41, %v310_v41  ;;  %v1161_v43 = vpop.f32.mrb[3].mxu0  ;;  %v674_v41 = vld [vmem:[#allocation5 + $0xf8] sm:$0xff] }
 0x2e4   :  { %v381_v44 = vpop.f32.mrb[2].mxu1 }
 0x2e5   :  { %v386_v45 = vmul.f32 0.25, %v385_v42  ;;  %v1196_v46 = vpop.f32.mrb[3].mxu1 }
 0x2e7   :  { %v387_v47 = vsub.f32 %v381_v44, %v386_v45 }
 0x2e9   :  { %v388_v48 = vmul.f32 0.33333334, %v387_v47 }
 0x2eb   :  { %v389_v49 = vmax.f32 %v388_v48, 1e-06  ;;  %v819_v48 = vld [vmem:[#allocation2 + $0x140] sm:$0xff] }
 0x2ed   :  { %v390_v50 = vmin.f32 %v389_v49, 1000000.0  ;;  %v820_v49 = vld [vmem:[#allocation2 + $0x148] sm:$0xff] }
 0x2ef   :  { %1491 = vlog2.f32 %v390_v50  ;;  %v1474_v50 = vpack.c.bf16 %v820_v49, %v819_v48 }
 0x2f9   :  { %v1492_v57 = vpop.eup %1491 }
 0x2fa   :  { %v392_v58 = vmul.f32 0.6931472, %v1492_v57 }
 0x2fc   :  { %v397_v62 = vmul.f32 %v396_v55, %v392_v58  ;;  %v407_v63 = vmul.f32 %v406_v56, %v392_v58  ;;  %v417_v6 = vmul.f32 %v416_v4, %v392_v58 }
 0x2fe   :  { %v402_v2 = vadd.f32 %v401_v59, %v397_v62  ;;  %v412_v3 = vadd.f32 %v411_v60, %v407_v63  ;;  %v422_v8 = vadd.f32 %v421_v7, %v417_v6 }
 0x300   :  { %1206 = vmatmul.mubr.msk.f32.vlgmr.msra.gmra.mrb[4].mxu0 %vm431_vm1, %v402_v2  ;;  %1217 = vmatmul.mubr.msk.f32.vlgmr.msra.gmra.mrb[4].mxu1 %vm431_vm1, %v412_v3 }
 0x301   :  { %1421 = vmatpush3.bf16.msra.mxu0 %v1414_v34  ;;  %1227 = vmatprep.mubr.msk.f32.mxu0 %vm1578_vm0, %v1579_v1  ;;  %v669_v34 = vld [vmem:[#allocation5 + $0xd0] sm:$0xff] }
 0x302   :  { %1422 = vmatprep.subr.bf16.mxu0 %v1577_v0  ;;  %1262 = vmatprep.mubr.msk.f32.mxu1 %vm1578_vm0, %v1579_v1  ;;  %v1441_v36 = vpack.c.bf16 %v670_v35, %v669_v34 }
 0x303   :  { %1427 = vmatpush3.bf16.msra.mxu1 %v1426_v12 }
 0x304   :  { %1428 = vmatprep.subr.bf16.mxu1 %v1577_v0 }
 0x305   :  { %1424 = vmatpush3.bf16.msra.mxu0 %v1417_v40  ;;  %v673_v40 = vld [vmem:[#allocation5 + $0xf0] sm:$0xff] }
 0x306   :  { %1449 = vmatprep.subr.bf16.mxu0 %v1577_v0  ;;  %v1447_v42 = vpack.c.bf16 %v674_v41, %v673_v40 }
 0x307   :  { %1430 = vmatpush3.bf16.msra.mxu1 %v1429_v15 }
 0x308   :  { %1228 = vmatmul.mubr.msk.f32.vlgmr.msra.gmra.mrb[6].mxu0 %vm431_vm1, %v422_v8  ;;  %1431 = vmatprep.subr.bf16.mxu1 %v1577_v0 }
 0x309   :  { %1297 = vmatprep.mubr.msk.f32.mxu0 %vm1578_vm0, %v1579_v1  ;;  %1451 = vmatpush3.bf16.msra.mxu0 %v1426_v12 }
 0x30a   :  { %1452 = vmatprep.subr.bf16.mxu0 %v1577_v0 }
 0x30b   :  { %1433 = vmatpush3.bf16.msra.mxu1 %v1432_v19 }
 0x30c   :  { %1434 = vmatprep.subr.bf16.mxu1 %v1577_v0 }
 0x30d   :  { %1454 = vmatpush3.bf16.msra.mxu0 %v1429_v15 }
 0x30e   :  { %1455 = vmatprep.subr.bf16.mxu0 %v1577_v0 }
 0x30f   :  { %1436 = vmatpush3.bf16.msra.mxu1 %v1435_v22 }
 0x310   :  { %1437 = vmatprep.subr.bf16.mxu1 %v1577_v0 }
 0x311   :  { %1457 = vmatpush3.bf16.msra.mxu0 %v1432_v19 }
 0x312   :  { %1458 = vmatprep.subr.bf16.mxu0 %v1577_v0 }
 0x313   :  { %1439 = vmatpush3.bf16.msra.mxu1 %v1438_v33 }
 0x314   :  { %1440 = vmatprep.subr.bf16.mxu1 %v1577_v0 }
 0x315   :  { %1460 = vmatpush3.bf16.msra.mxu0 %v1435_v22 }
 0x316   :  { %1461 = vmatprep.subr.bf16.mxu0 %v1577_v0 }
 0x317   :  { %1442 = vmatpush3.bf16.msra.mxu1 %v1441_v36 }
 0x318   :  { %1443 = vmatprep.subr.bf16.mxu1 %v1577_v0 }
 0x319   :  { %1463 = vmatpush3.bf16.msra.mxu0 %v1438_v33 }
 0x31a   :  { %1464 = vmatprep.subr.bf16.mxu0 %v1577_v0 }
 0x31b   :  { %1445 = vmatpush3.bf16.msra.mxu1 %v1444_v39 }
 0x31c   :  { %1446 = vmatprep.subr.bf16.mxu1 %v1577_v0 }
 0x31d   :  { %1466 = vmatpush3.bf16.msra.mxu0 %v1441_v36 }
 0x31e   :  { %1467 = vmatprep.subr.bf16.mxu0 %v1577_v0 }
 0x31f   :  { %1448 = vmatpush3.bf16.msra.mxu1 %v1447_v42 }
 0x320   :  { %1473 = vmatprep.subr.bf16.mxu1 %v1577_v0 }
 0x321   :  { %1469 = vmatpush3.bf16.msra.mxu0 %v1444_v39 }
 0x322   :  { %1470 = vmatprep.subr.bf16.mxu0 %v1577_v0 }
 0x325   :  { %1472 = vmatpush3.bf16.msra.mxu0 %v1447_v42 }
 0x3d3   :  { %v501_v23 = vpop.f32.mrb[4].mxu0  ;;  %v574_v24 = vpop.f32.mrb[4].mxu1 }
 0x3d4   :  { %v651_v25 = vmul.f32 %v574_v24, %v501_v23  ;;  %v1207_v26 = vpop.f32.mrb[5].mxu0  ;;  %v1218_v27 = vpop.f32.mrb[5].mxu1 }
 0x3d6   :  { %v653_v28 = vsel %vm652_vm2, %v651_v25, -inf }
 0x3d7   :  { %654 = vmax.xlane.f32.xlu0 %v653_v28 }
 0x3db   :  { %v647_v29 = vpop.f32.mrb[6].mxu0 }
 0x3dc   :  { %v1229_v30 = vpop.f32.mrb[7].mxu0 }
 0x464   :  { %v655_v43 = vpop.xlane.xlu0 %654 }
 0x465   :  { %v656_v44 = vsub.f32 %v651_v25, %v655_v43 }
 0x467   :  { %v657_v45 = vmul.f32 1.442695, %v656_v44 }
 0x469   :  { %1493 = vpow2.f32 %v657_v45 }
 0x473   :  { %v1494_v46 = vpop.eup %1493 }
 0x474   :  { %1263 = vmatmul.mubr.f32.vlgmr.msra.gmra.mrb[6].mxu1 %v1494_v46  ;;  %v745_v47 = vmul.f32 %v1494_v46, %v647_v29 }
 0x475   :  { %1308 = vmatprep.mubr.msk.f32.mxu1 %vm1578_vm0, %v1579_v1  ;;  %1475 = vmatpush3.bf16.msra.mxu1 %v1474_v50  ;;  %v825_v1 = vsub.s32 1, %v1660_v14 }
 0x476   :  { %1298 = vmatmul.mubr.f32.vlgmr.msra.gmra.mrb[8].mxu0 %v745_v47  ;;  %1476 = vmatprep.subr.bf16.mxu1 %v1577_v0 }
 0x477   :  { %v826_v61 = vrot.slane %v1663_v16, %v825_v1 }
 0x479   :  { %1478 = vmatpush3.bf16.msra.mxu1 %v1477_v53 }
 0x547   :  { %v741_v54 = vpop.f32.mrb[6].mxu1 }
 0x548   :  { %v816_v55 = vmax.f32 %v741_v54, 1e-30  ;;  %v1264_v56 = vpop.f32.mrb[7].mxu1 }
 0x549   :  { %v812_v57 = vpop.f32.mrb[8].mxu0 }
 0x54a   :  { %1495 = vrcp.f32 %v816_v55  ;;  %v1299_v58 = vpop.f32.mrb[9].mxu0 }
 0x554   :  { %v1496_v59 = vpop.eup %1495 }
 0x555   :  { %v818_v60 = vmul.f32 %v1496_v59, %v812_v57 }
 0x557   :  { %1309 = vmatmul.mubr.msk.f32.vlgmr.msra.gmra.mrb[8].mxu1 %vm431_vm1, %v818_v60 }
 0x62a   :  { %v896_v62 = vpop.f32.mrb[8].mxu1 }
 0x62b   :  { %v897_v0 = vadd.f32 %v896_v62, %v826_v61  ;;  %v1310_v63 = vpop.f32.mrb[9].mxu1 }
 0x62d   :  { %v900_v2 = vsel %vm652_vm2, %v897_v0, -inf }
 0x62e   :  { %901 = vmax.xlane.f32.xlu0 %v900_v2 }
 0x6bb   :  { %v902_v3 = vpop.xlane.xlu0 %901 }
 0x6bc   :  { %v903_v4 = vsub.f32 %v897_v0, %v902_v3 }
 0x6be   :  { %v904_v5 = vmul.f32 1.442695, %v903_v4 }
 0x6c0   :  { %1497 = vpow2.f32 %v904_v5 }
 0x6ca   :  { %v1498_v6 = vpop.eup %1497 }
 0x6cb   :  { %v906_v7 = vsel %vm652_vm2, %v1498_v6, 0.0 }
 0x6cc   :  { %907 = vadd.xlane.f32.xlu1 %v906_v7 }
 0x759   :  { %v908_v8 = vpop.xlane.xlu1 %907 }
 0x75a   :  { %1499 = vlog2.f32 %v908_v8 }
 0x764   :  { %v1500_v9 = vpop.eup %1499 }
 0x765   :  { %v910_v14 = vmul.f32 0.6931472, %v1500_v9 }
 0x767   :  { %v911_v16 = vadd.f32 %v910_v14, %v902_v3 }
 0x769   :  { %v912_v10 = vsub.f32 %v897_v0, %v911_v16 }
 0x76b   :  { %913 = vst [vmem:[#allocation7] sm:$0x3] %v912_v10 }
 0x76c   :  { %1556 = shalt.err (!%p1553_p6)
}
 0x76d   :  { %s1557_s15 = scalar_lea.hbm %s1746_s3, 32 }
 0x76e   :  { %p1558_p7 = scmp.ne.s32.totalorder %s1746_s3, %s1557_s15  ;;  %p1561_p8 = scmp.lt.u32.totalorder %s1557_s15, %s1746_s3 }
 0x770   :  { %p1563_p9 = pnand %p1561_p8, %p1558_p7 }
 0x772   :  { %1566 = shalt.err (!%p1563_p9)
}
 0x773   :  { %923 = dma.vmem_to_hbm [thread:$0]  %s921_s11, 32, %s1746_s3, [#allocation4]  }
 0x774   :  { %1571 = dma.done.wait [#allocation4], 32  }
 0x775   :  { %1572 = vsyncadd [#allocation4], 4294967264 }
 0x776   :  { %927 = vsyncpa [#allocation3], 1 }
 0x777   :  { %928 = vsyncpa [#allocation6], 1 }
 0x778   :  { %929 = vsyncpa [#allocation4], 1 }

</bundles_post_ra>
